<compile_context>
chip_gen: v6e
topology: v6e:2x2x1
jax: 0.10.0
libtpu: 0.0.40
codegen_flags: <defaults>
</compile_context>

<pallas_src>
import functools

import jax
import jax.numpy as jnp
from jax import lax
from jax.experimental import pallas as pl
from jax.experimental.pallas import tpu as pltpu


_LANE = 128
_DEFAULT_CHUNK = 16 * 1024          # lanes per in-kernel sub-chunk (multiple of 128)


def _round_up(x, m):
    return ((x + m - 1) // m) * m


def _netsame_kernel(params_ref, xt_ref, o_ref, *, chunk, n_chunks):
    # params_ref: (16, 8) packed, VMEM-resident across all grid steps
    #   [:, 0:5] = fc1.weight (16, 5)
    #   [:, 5]   = fc1.bias   (16,)
    #   [:, 6]   = fc2.weight (16,)  (stored as a column)
    #   [0, 7]   = fc2.bias   scalar
    # xt_ref:     (5, TB)  batch on the lane axis
    # o_ref:      (1, TB)  lane-dense output tile
    p = params_ref[...]                        # (16, 8) f32
    w1 = p[:, 0:5]                             # (16, 5)
    b1 = p[:, 5:6]                             # (16, 1)
    w2 = p[:, 6:7]                             # (16, 1)
    b2 = p[0:1, 7:8]                           # (1, 1)

    def do_chunk(start):
        xt = xt_ref[:, pl.ds(start, chunk)]    # (5, chunk)
        # Layer 1 on the MXU: h[o, b] = sum_i w1[o, i] * x[i, b] + b1[o]
        h = jnp.dot(w1, xt, preferred_element_type=jnp.float32) + b1   # (16, chunk)
        h = jnp.maximum(h, 0.0)                                        # ReLU
        # Layer 2 on VPU/XLU: y[b] = sum_o w2[o] * h[o, b] + b2
        y = jnp.sum(w2 * h, axis=0, keepdims=True) + b2                # (1, chunk)
        o_ref[:, pl.ds(start, chunk)] = y.astype(o_ref.dtype)

    if n_chunks == 1:
        do_chunk(0)
    else:
        def body(c, carry):
            do_chunk(pl.multiple_of(c * chunk, _LANE))
            return carry
        lax.fori_loop(0, n_chunks, body, 0, unroll=False)


def pack_params(w1, b1, w2, b2):
    """Pack PyTorch-layout params into a single (16, 8) f32 block."""
    # w1: (16, 5) fc1.weight, b1: (16,) fc1.bias,
    # w2: (1, 16) fc2.weight, b2: (1,)  fc2.bias
    p = jnp.zeros((16, 8), jnp.float32)
    p = p.at[:, 0:5].set(w1.astype(jnp.float32))
    p = p.at[:, 5].set(b1.astype(jnp.float32))
    p = p.at[:, 6].set(w2[0, :].astype(jnp.float32))
    p = p.at[0, 7].set(b2[0].astype(jnp.float32))
    return p


def _default_tb(B, chunk):
    """Generation-aware default batch tile (in lanes)."""
    try:
        kind = jax.devices()[0].device_kind.lower()
    except Exception:  # pragma: no cover - conservative fallback
        kind = ""
    # v5e: 16 MiB default scoped VMEM + lower HBM BW -> 64K lanes already ~80%+
    # of roofline.  v6e/v7x: 128K lanes (fits easily with in-kernel chunking).
    if ("v5 lite" in kind) or ("v5e" in kind) or ("v5litepod" in kind):
        cap = 65536
    else:
        cap = 131072
    need = _round_up(max(B, 1), _LANE)
    if need <= chunk:
        return need
    return min(_round_up(need, chunk), cap)


def netsame_forward_t(xt, params, *, tb=None, chunk=_DEFAULT_CHUNK, buffers=2):
    """Feature-major entry point (preferred: no wrapper transpose).

    xt:     (5, B) f32   activations, batch on the last (lane) axis.
    params: (16, 8) f32  packed parameters (see pack_params).
    returns (B, 1) f32.
    """
    F, B = xt.shape
    assert F == 5
    assert chunk % _LANE == 0

    if tb is None:
        tb = _default_tb(B, chunk)
    assert tb % _LANE == 0, "batch tile must be lane-aligned (multiple of 128)"

    if tb <= chunk:
        chunk_eff, n_chunks = tb, 1
    else:
        assert tb % chunk == 0, "tb must be a multiple of chunk when tb > chunk"
        chunk_eff, n_chunks = chunk, tb // chunk

    # Last block may be partial: OOB output lanes are dropped, OOB input garbage
    # only feeds discarded lanes (per-lane math), so no padding is needed.
    n_tiles = pl.cdiv(B, tb)

    kernel = functools.partial(_netsame_kernel, chunk=chunk_eff, n_chunks=n_chunks)

    # Advisory scheduler hint, from the *unpadded* batch.
    flops = 2 * B * (5 * 16 + 16)
    bytes_accessed = 4 * (5 * B + B + int(params.size))

    xt_spec_kwargs = {}
    out_spec_kwargs = {}
    if buffers > 2:
        # Deeper prefetch helps mid-size tiles; default double-buffering >=128K.
        xt_spec_kwargs = dict(pipeline_mode=pl.Buffered(buffers))
        out_spec_kwargs = dict(pipeline_mode=pl.Buffered(buffers))

    out = pl.pallas_call(
        kernel,
        out_shape=jax.ShapeDtypeStruct((1, B), jnp.float32),
        grid_spec=pltpu.PrefetchScalarGridSpec(
            num_scalar_prefetch=0,
            grid=(n_tiles,),
            in_specs=[
                # Packed params: same block every step -> stays VMEM-resident.
                pl.BlockSpec((16, 8), lambda i: (0, 0)),
                # Batch tile of the feature-major input.
                pl.BlockSpec((5, tb), lambda i: (0, i), **xt_spec_kwargs),
            ],
            out_specs=pl.BlockSpec((1, tb), lambda i: (0, i), **out_spec_kwargs),
        ),
        compiler_params=pltpu.CompilerParams(
            dimension_semantics=("parallel",),      # megacore-shard the batch
            vmem_limit_bytes=48 * 1024 * 1024,      # headroom for big tiles, < v7x 64 MiB
        ),
        cost_estimate=pl.CostEstimate(
            flops=flops, transcendentals=0, bytes_accessed=bytes_accessed),
    )(params, xt.astype(jnp.float32))

    # (1, B) -> (B, 1) is an order-preserving (free) reshape.
    return out.reshape(B, 1)


def netsame_forward(x, params, **kw):
    """Torch-layout adapter: x is (B, 5).

    NOTE: this does a wrapper-side transpose (one extra HBM round trip).  For
    bandwidth-bound deployments produce activations feature-major (5, B)
    upstream and call netsame_forward_t directly.
    """
    return netsame_forward_t(x.astype(jnp.float32).T, params, **kw)


def init_params(key):
    # Deterministic init mimicking PyTorch nn.Linear defaults
    # (uniform(-1/sqrt(fan_in), 1/sqrt(fan_in))), stored in PyTorch layout.
    k1, k2, k3, k4 = jax.random.split(key, 4)
    bound1 = 1.0 / jnp.sqrt(5.0)
    w1 = jax.random.uniform(k1, (16, 5), jnp.float32, -bound1, bound1)
    b1 = jax.random.uniform(k2, (16,), jnp.float32, -bound1, bound1)
    bound2 = 1.0 / jnp.sqrt(16.0)
    w2 = jax.random.uniform(k3, (1, 16), jnp.float32, -bound2, bound2)
    b2 = jax.random.uniform(k4, (1,), jnp.float32, -bound2, bound2)
    return w1, b1, w2, b2


if __name__ == "__main__":
    key = jax.random.PRNGKey(0)
    kx, kp = jax.random.split(key)

    # Small batch, deliberately NOT a multiple of 128 to exercise the
    # partial-last-block path (no padding anywhere).
    B = 1000
    w1, b1, w2, b2 = init_params(kp)
    params = pack_params(w1, b1, w2, b2)

    # Activations produced feature-major (5, B): the kernel sees lane-dense
    # batches without any wrapper-side transpose.
    xt = jax.random.normal(kx, (5, B), jnp.float32)

    # Pure-JAX reference (PyTorch semantics: x @ W1.T + b1 -> ReLU -> @ W2.T + b2).
    x = xt.T
    ref = jnp.maximum(x @ w1.T + b1, 0.0) @ w2.T + b2

    # 1) Auto tile (rounds B up to 1024 lanes -> single partial block).
    out1 = netsame_forward_t(xt, params)
    jax.block_until_ready(out1)
    assert out1.shape == (B, 1)
    assert jnp.allclose(out1, ref, atol=1e-5, rtol=1e-5)

    # 2) Small tile + small inner chunk: multi-tile grid, partial last block,
    #    and the in-kernel lane-chunk fori_loop all exercised at small scale.
    out2 = netsame_forward_t(xt, params, tb=512, chunk=128)
    jax.block_until_ready(out2)
    assert jnp.allclose(out2, ref, atol=1e-5, rtol=1e-5)

    # 3) Torch-layout adapter (documents the transpose cost; semantics identical).
    out3 = netsame_forward(x, params, tb=256)
    jax.block_until_ready(out3)
    assert jnp.allclose(out3, ref, atol=1e-5, rtol=1e-5)

    print("KERNEL_OK")
</pallas_src>

<mosaic_0001>
module attributes {stable_mosaic.version = 11 : i64} {
  func.func @_netsame_kernel(%arg0: i32, %arg1: memref<16x8xf32, #tpu.memory_space<vmem>>, %arg2: memref<5x1024xf32, #tpu.memory_space<vmem>>, %arg3: memref<1x1024xf32, #tpu.memory_space<vmem>>) attributes {dimension_semantics = [#tpu.dimension_semantics<parallel>], iteration_bounds = array<i64: 1>, scalar_prefetch = 0 : i64, scratch_operands = 0 : i64, tpu.core_type = #tpu.core_type<tc>, window_params = [{pipeline_mode = #tpu.pipeline_mode<synchronous>, transform_indices = @transform_0, window_bounds = array<i64: 16, 8>}, {transform_indices = @transform_1, window_bounds = array<i64: 5, 1024>}, {transform_indices = @transform_2, window_bounds = array<i64: 1, 1024>}]} {
    %c0 = arith.constant 0 : index
    %c0_0 = arith.constant 0 : index
    %0 = vector.load %arg1[%c0, %c0_0] : memref<16x8xf32, #tpu.memory_space<vmem>>, vector<16x8xf32>
    %1 = vector.extract_strided_slice %0 {offsets = [0, 0], sizes = [16, 5], strides = [1, 1]} : vector<16x8xf32> to vector<16x5xf32>
    %2 = vector.extract_strided_slice %0 {offsets = [0, 5], sizes = [16, 1], strides = [1, 1]} : vector<16x8xf32> to vector<16x1xf32>
    %3 = vector.extract_strided_slice %0 {offsets = [0, 6], sizes = [16, 1], strides = [1, 1]} : vector<16x8xf32> to vector<16x1xf32>
    %4 = vector.extract_strided_slice %0 {offsets = [0, 7], sizes = [1, 1], strides = [1, 1]} : vector<16x8xf32> to vector<1x1xf32>
    %c0_1 = arith.constant 0 : index
    %c0_2 = arith.constant 0 : index
    %5 = vector.load %arg2[%c0_1, %c0_2] : memref<5x1024xf32, #tpu.memory_space<vmem>>, vector<5x1024xf32>
    %cst = arith.constant dense<0.000000e+00> : vector<16x1024xf32>
    %6 = tpu.matmul %1, %5, %cst {dimension_numbers = #tpu.dot_dimension_numbers<[1], [0], [0], [1], [0, 0, 1, 1], [], []>} : vector<16x5xf32>, vector<5x1024xf32>, vector<16x1024xf32> -> vector<16x1024xf32>
    %7 = vector.broadcast %2 : vector<16x1xf32> to vector<16x1024xf32>
    %8 = arith.addf %6, %7 : vector<16x1024xf32>
    %cst_3 = arith.constant 0.000000e+00 : f32
    %9 = vector.broadcast %cst_3 : f32 to vector<16x1024xf32>
    %10 = arith.maximumf %8, %9 : vector<16x1024xf32>
    %11 = vector.broadcast %3 : vector<16x1xf32> to vector<16x1024xf32>
    %12 = arith.mulf %11, %10 : vector<16x1024xf32>
    %cst_4 = arith.constant dense<0.000000e+00> : vector<1024xf32>
    %13 = vector.multi_reduction <add>, %12, %cst_4 [0] : vector<16x1024xf32> to vector<1024xf32>
    %14 = vector.shape_cast %13 : vector<1024xf32> to vector<1x1024xf32>
    %15 = vector.broadcast %4 : vector<1x1xf32> to vector<1x1024xf32>
    %16 = arith.addf %14, %15 : vector<1x1024xf32>
    %c0_5 = arith.constant 0 : index
    %c0_6 = arith.constant 0 : index
    %17 = vector.load %arg3[%c0_5, %c0_6] : memref<1x1024xf32, #tpu.memory_space<vmem>>, vector<1x1024xf32>
    tpu.vector_store %arg3[%c0_5, %c0_6], %16 {strides = array<i32>} : memref<1x1024xf32, #tpu.memory_space<vmem>>, vector<1x1024xf32>,
    return
  }
  func.func @transform_0(%arg0: i32) -> (i32, i32) {
    %c0_i32 = arith.constant 0 : i32
    %c0_i32_0 = arith.constant 0 : i32
    %c0_i32_1 = arith.constant 0 : i32
    return %c0_i32, %c0_i32_0 : i32, i32
  }
  func.func @transform_1(%arg0: i32) -> (i32, i32) {
    %c0_i32 = arith.constant 0 : i32
    %c0_i32_0 = arith.constant 0 : i32
    return %c0_i32, %arg0 : i32, i32
  }
  func.func @transform_2(%arg0: i32) -> (i32, i32) {
    %c0_i32 = arith.constant 0 : i32
    %c0_i32_0 = arith.constant 0 : i32
    return %c0_i32, %arg0 : i32, i32
  }
}

</mosaic_0001>

<bundles_post_ra>
// kernel: tpu_custom_call.1
= control target key start
LH: loop header
LB: loop body
LE: loop exit
PB: predicated region body
PF: predicated region fallthrough
CT: control target
= control target key end

     0   :  { %7 = vsyncpa [#allocation3], 0  ;;  %s718_s0 = inlined_call_operand.vmem [shape: f32[16,8], index: 0, kind: input, shape index: {}]   ;;  %s719_s1 = inlined_call_operand.hbm [shape: f32[5,1000], index: 1, kind: input, shape index: {}]   ;;  %s720_s2 = inlined_call_operand.hbm [shape: f32[1,1000], index: 2, kind: output, shape index: {}]  }
   0x1   :  { %8 = vsyncpa [#allocation4], 0  ;;  %s634_s9 = smov [#allocation2]  }
   0x2   :  { %s17_s10 = sshll.u32 %s634_s9, 4  ;;  %s18_s10 = int_to_ptr.vmem [resolvable:$true] %s17_s10 }
   0x3   :  { %s598_s11 = scalar_lea.vmem %s18_s10, 1024  ;;  %p603_p1 = scmp.lt.s32.totalorder %s18_s10, %s18_s10 }
   0x4   :  { %p599_p0 = scmp.ne.s32.totalorder %s18_s10, %s598_s11  ;;  %p604_p2 = scmp.lt.s32.totalorder %s598_s11, %s598_s11 }
   0x6   :  { %p605_p3 = por %p604_p2, %p603_p1 }
   0x8   :  { %p606_p4 = pnand %p605_p3, %p599_p0 }
   0xa   :  { %609 = shalt.err (!%p606_p4)
}
   0xb   :  { %20 = dma.hbm_to_vmem [thread:$0]  %s719_s1, 1024, %s18_s10, [#allocation3]  }
   0xc   :  { %630 = dma.done.wait [#allocation3], 1024  }
   0xd   :  { %631 = vsyncadd [#allocation3], 4294966272  ;;  %v635_v0 = vmov 0.0   ;;  %v636_v1 = vmov 5   ;;  %v637_v2 = vmov 6   ;;  %vm49_vm0 = vcmask 1044480  }
   0xe   :  { %138 = vmatprep.mubr.f32.mxu0 %v635_v0  ;;  %215 = vmatprep.mubr.f32.mxu1 %v635_v0  ;;  %vm44_vm1 = vcmask 39936   ;;  %v27_v3 = vld [vmem:[#allocation2 + $0x8] sm:$0x1f]  ;;  %v29_v4 = vld [vmem:[#allocation2 + $0x18] sm:$0x1f]  ;;  %v24_v7 = vld [vmem:[%s718_s0] sm:$0xff]  ;;  %v505_v46 = vlaneseq }
   0xf   :  { %587 = vset.pattern.permute.xlu0 %v636_v1  ;;  %588 = vset.pattern.permute.xlu1 %v637_v2  ;;  %v26_v5 = vld [vmem:[#allocation2] sm:$0x1f]  ;;  %v28_v6 = vld [vmem:[#allocation2 + $0x10] sm:$0x1f]  ;;  %v31_v8 = vld [vmem:[#allocation2 + $0x28] sm:$0x1f] }
  0x10   :  { %564 = vmatprep.subr.msk.mxu0 %vm49_vm0, %v27_v3  ;;  %568 = vmatprep.subr.msk.mxu1 %vm49_vm0, %v29_v4  ;;  %v33_v9 = vld [vmem:[#allocation2 + $0x38] sm:$0x1f]  ;;  %v30_v10 = vld [vmem:[#allocation2 + $0x20] sm:$0x1f]  ;;  %v32_v11 = vld [vmem:[#allocation2 + $0x30] sm:$0x1f] }
  0x11   :  { %565 = vmatpush1.msk.msra.mxu0 %vm49_vm0, %v26_v5  ;;  %569 = vmatpush1.msk.msra.mxu1 %vm49_vm0, %v28_v6  ;;  %v25_v12 = vld [vmem:[%s718_s0 + $0x8] sm:$0xff]  ;;  %v638_v13 = vmov 7   ;;  %v639_v44 = vmov 1966171168   ;;  %s640_s0 = smov [#allocation5]  }
  0x12   :  { %566 = vmatmul.mubr.msk.f32.vlgmr.msra.gmra.mxu0 %vm44_vm1, %v24_v7  ;;  %570 = vmatmul.mubr.msk.f32.vlgmr.msra.gmra.mxu1 %vm44_vm1, %v24_v7  ;;  %v693_v45 = vunpack.c.l.s4 %v639_v44  ;;  %s555_s17 = sshll.u32 %s640_s0, 4  ;;  %s556_s17 = int_to_ptr.vmem [resolvable:$true] %s555_s17 }
  0x13   :  { %572 = vmatprep.subr.msk.mxu0 %vm49_vm0, %v31_v8  ;;  %576 = vmatprep.subr.msk.mxu1 %vm49_vm0, %v33_v9  ;;  %s610_s18 = scalar_lea.vmem %s556_s17, 128  ;;  %p615_p6 = scmp.lt.s32.totalorder %s556_s17, %s556_s17 }
  0x14   :  { %573 = vmatpush1.msk.msra.mxu0 %vm49_vm0, %v30_v10  ;;  %577 = vmatpush1.msk.msra.mxu1 %vm49_vm0, %v32_v11  ;;  %p611_p5 = scmp.ne.s32.totalorder %s556_s17, %s610_s18  ;;  %p616_p7 = scmp.lt.s32.totalorder %s610_s18, %s610_s18 }
  0x15   :  { %144 = vmatprep.mubr.f32.mxu0 %v635_v0  ;;  %221 = vmatprep.mubr.f32.mxu1 %v635_v0 }
  0x16   :  { %567 = vmatmul.mubr.msk.f32.gmra.mxu0 %vm44_vm1, %v25_v12  ;;  %571 = vmatmul.mubr.msk.f32.gmra.mxu1 %vm44_vm1, %v25_v12  ;;  %p617_p8 = por %p616_p7, %p615_p6 }
  0x17   :  { %292 = vmatprep.mubr.f32.mxu0 %v635_v0  ;;  %369 = vmatprep.mubr.f32.mxu1 %v635_v0 }
  0x18   :  { %36 = vperm.xlu0 %587, %v24_v7   ;;  %399 = vperm.xlu1 %588, %v24_v7   ;;  %p618_p9 = pnand %p617_p8, %p611_p5 }
  0x1a   :  { %574 = vmatmul.mubr.msk.f32.vlgmr.msra.gmra.mxu0 %vm44_vm1, %v24_v7  ;;  %578 = vmatmul.mubr.msk.f32.vlgmr.msra.gmra.mxu1 %vm44_vm1, %v24_v7 }
  0x1b   :  { %298 = vmatprep.mubr.f32.mxu0 %v635_v0  ;;  %375 = vmatprep.mubr.f32.mxu1 %v635_v0 }
  0x1c   :  { %41 = vperm.xlu0 %587, %v25_v12   ;;  %403 = vperm.xlu1 %588, %v25_v12  }
  0x1e   :  { %575 = vmatmul.mubr.msk.f32.gmra.mxu0 %vm44_vm1, %v25_v12  ;;  %579 = vmatmul.mubr.msk.f32.gmra.mxu1 %vm44_vm1, %v25_v12 }
  0x20   :  { %589 = vset.pattern.permute.xlu0 %v638_v13 }
  0x21   :  { %479 = vperm.xlu0 %589, %v24_v7  }
  0x93   :  { %v37_v14 = vpop.permute.xlu0 %36  ;;  %v681_v15 = vpop.permute.xlu1 %399 }
  0x97   :  { %v683_v20 = vpop.permute.xlu0 %41  ;;  %v687_v31 = vpop.permute.xlu1 %403 }
  0xd2   :  { %v140_v16 = vpop.f32.mrf.mxu0  ;;  %v217_v17 = vpop.f32.mrf.mxu1 }
  0xd3   :  { %v141_v18 = vadd.f32 %v140_v16, %v37_v14  ;;  %v218_v19 = vadd.f32 %v217_v17, %v37_v14 }
  0xd4   :  { %v142_v21 = vpop.f32.mrf.mxu0  ;;  %v219_v22 = vpop.f32.mrf.mxu1 }
  0xd5   :  { %v143_v23 = vadd.f32 %v142_v21, %v37_v14  ;;  %v220_v24 = vadd.f32 %v219_v22, %v37_v14  ;;  %v382_v25 = vmax.f32 %v141_v18, 0.0  ;;  %v384_v26 = vmax.f32 %v218_v19, 0.0 }
  0xd6   :  { %v146_v27 = vpop.f32.mrf.mxu0  ;;  %v223_v28 = vpop.f32.mrf.mxu1 }
  0xd7   :  { %v147_v29 = vadd.f32 %v146_v27, %v683_v20  ;;  %v224_v30 = vadd.f32 %v223_v28, %v683_v20  ;;  %v383_v32 = vmax.f32 %v143_v23, 0.0  ;;  %v385_v33 = vmax.f32 %v220_v24, 0.0 }
  0xd8   :  { %v148_v34 = vpop.f32.mrf.mxu0  ;;  %v225_v35 = vpop.f32.mrf.mxu1  ;;  %v406_v40 = vmul.f32 %v681_v15, %v382_v25  ;;  %v408_v41 = vmul.f32 %v681_v15, %v384_v26 }
  0xd9   :  { %v390_v36 = vmax.f32 %v147_v29, 0.0  ;;  %v392_v37 = vmax.f32 %v224_v30, 0.0  ;;  %v149_v38 = vadd.f32 %v148_v34, %v683_v20  ;;  %v226_v39 = vadd.f32 %v225_v35, %v683_v20 }
  0xda   :  { %v294_v42 = vpop.f32.mrf.mxu0  ;;  %v371_v43 = vpop.f32.mrf.mxu1  ;;  %v407_v51 = vmul.f32 %v681_v15, %v383_v32  ;;  %v409_v52 = vmul.f32 %v681_v15, %v385_v33 }
  0xdb   :  { %v391_v47 = vmax.f32 %v149_v38, 0.0  ;;  %v393_v48 = vmax.f32 %v226_v39, 0.0  ;;  %v414_v49 = vmul.f32 %v687_v31, %v390_v36  ;;  %v416_v50 = vmul.f32 %v687_v31, %v392_v37 }
  0xdc   :  { %v295_v53 = vadd.f32 %v294_v42, %v37_v14  ;;  %v372_v54 = vadd.f32 %v371_v43, %v37_v14  ;;  %v296_v55 = vpop.f32.mrf.mxu0  ;;  %v373_v56 = vpop.f32.mrf.mxu1 }
  0xdd   :  { %v415_v57 = vmul.f32 %v687_v31, %v391_v47  ;;  %v417_v58 = vmul.f32 %v687_v31, %v393_v48  ;;  %v422_v59 = vadd.f32 %v414_v49, %v406_v40  ;;  %v436_v60 = vadd.f32 %v416_v50, %v408_v41 }
  0xde   :  { %v386_v61 = vmax.f32 %v295_v53, 0.0  ;;  %v388_v62 = vmax.f32 %v372_v54, 0.0  ;;  %v297_v63 = vadd.f32 %v296_v55, %v37_v14  ;;  %v374_v0 = vadd.f32 %v373_v56, %v37_v14  ;;  %v300_v1 = vpop.f32.mrf.mxu0  ;;  %v377_v2 = vpop.f32.mrf.mxu1 }
  0xdf   :  { %v423_v3 = vrot.slane %v422_v59, 4  ;;  %v429_v4 = vadd.f32 %v415_v57, %v407_v51  ;;  %v437_v5 = vrot.slane %v436_v60, 4  ;;  %v443_v6 = vadd.f32 %v417_v58, %v409_v52 }
  0xe0   :  { %v410_v7 = vmul.f32 %v681_v15, %v386_v61  ;;  %v412_v8 = vmul.f32 %v681_v15, %v388_v62  ;;  %v387_v9 = vmax.f32 %v297_v63, 0.0  ;;  %v389_v10 = vmax.f32 %v374_v0, 0.0  ;;  %v302_v11 = vpop.f32.mrf.mxu0  ;;  %v379_v12 = vpop.f32.mrf.mxu1 }
  0xe1   :  { %v424_v13 = vadd.f32 %v423_v3, %v422_v59  ;;  %v430_v16 = vrot.slane %v429_v4, 4  ;;  %v438_v17 = vadd.f32 %v437_v5, %v436_v60  ;;  %v444_v18 = vrot.slane %v443_v6, 4  ;;  %v480_v63 = vpop.permute.xlu0 %479 }
  0xe2   :  { %v411_v14 = vmul.f32 %v681_v15, %v387_v9  ;;  %v413_v19 = vmul.f32 %v681_v15, %v389_v10  ;;  %v301_v21 = vadd.f32 %v300_v1, %v683_v20  ;;  %v378_v22 = vadd.f32 %v377_v2, %v683_v20 }
  0xe3   :  { %v431_v23 = vadd.f32 %v430_v16, %v429_v4  ;;  %v445_v24 = vadd.f32 %v444_v18, %v443_v6  ;;  %v303_v25 = vadd.f32 %v302_v11, %v683_v20  ;;  %v380_v26 = vadd.f32 %v379_v12, %v683_v20 }
  0xe4   :  { %v394_v27 = vmax.f32 %v301_v21, 0.0  ;;  %v396_v28 = vmax.f32 %v378_v22, 0.0  ;;  %v425_v29 = vrot.slane %v424_v13, 2  ;;  %v439_v30 = vrot.slane %v438_v17, 2 }
  0xe5   :  { %v395_v32 = vmax.f32 %v303_v25, 0.0  ;;  %v397_v33 = vmax.f32 %v380_v26, 0.0  ;;  %v432_v34 = vrot.slane %v431_v23, 2  ;;  %v446_v35 = vrot.slane %v445_v24, 2 }
  0xe6   :  { %v418_v15 = vmul.f32 %v687_v31, %v394_v27  ;;  %v420_v36 = vmul.f32 %v687_v31, %v396_v28  ;;  %v426_v37 = vadd.f32 %v425_v29, %v424_v13  ;;  %v440_v38 = vadd.f32 %v439_v30, %v438_v17 }
  0xe7   :  { %v419_v39 = vmul.f32 %v687_v31, %v395_v32  ;;  %v421_v40 = vmul.f32 %v687_v31, %v397_v33  ;;  %v433_v41 = vadd.f32 %v432_v34, %v431_v23  ;;  %v447_v20 = vadd.f32 %v446_v35, %v445_v24 }
  0xe8   :  { %v450_v42 = vadd.f32 %v418_v15, %v410_v7  ;;  %v464_v43 = vadd.f32 %v420_v36, %v412_v8  ;;  %v427_v44 = vrot.slane %v426_v37, 1  ;;  %v441_v47 = vrot.slane %v440_v38, 1 }
  0xe9   :  { %v457_v48 = vadd.f32 %v419_v39, %v411_v14  ;;  %v471_v49 = vadd.f32 %v421_v40, %v413_v19  ;;  %v434_v50 = vrot.slane %v433_v41, 1  ;;  %v448_v51 = vrot.slane %v447_v20, 1 }
  0xea   :  { %v451_v52 = vrot.slane %v450_v42, 4  ;;  %v465_v53 = vrot.slane %v464_v43, 4  ;;  %v428_v60 = vadd.f32 %v427_v44, %v426_v37  ;;  %v442_v31 = vadd.f32 %v441_v47, %v440_v38 }
  0xeb   :  { %v458_v54 = vrot.slane %v457_v48, 4  ;;  %v472_v55 = vrot.slane %v471_v49, 4  ;;  %v435_v56 = vadd.f32 %v434_v50, %v433_v41  ;;  %v449_v57 = vadd.f32 %v448_v51, %v447_v20 }
  0xec   :  { %v452_v58 = vadd.f32 %v451_v52, %v450_v42  ;;  %v466_v59 = vadd.f32 %v465_v53, %v464_v43  ;;  %v504_v0 = vunpack.c.0.s8 %v693_v45  ;;  %v506_v1 = vshrl.u32 %v505_v46, 7 }
  0xed   :  { %v459_v61 = vadd.f32 %v458_v54, %v457_v48  ;;  %v473_v62 = vadd.f32 %v472_v55, %v471_v49  ;;  %v483_v4 = vadd.f32 %v480_v63, %v435_v56  ;;  %v485_v5 = vadd.f32 %v480_v63, %v449_v57 }
  0xee   :  { %v453_v2 = vrot.slane %v452_v58, 2  ;;  %v467_v3 = vrot.slane %v466_v59, 2  ;;  %v482_v10 = vadd.f32 %v480_v63, %v428_v60  ;;  %v484_v11 = vadd.f32 %v480_v63, %v442_v31 }
  0xef   :  { %v460_v6 = vrot.slane %v459_v61, 2  ;;  %v474_v7 = vrot.slane %v473_v62, 2  ;;  %v507_v16 = vsub.s32 %v504_v0, %v506_v1 }
  0xf0   :  { %v454_v8 = vadd.f32 %v453_v2, %v452_v58  ;;  %v468_v9 = vadd.f32 %v467_v3, %v466_v59  ;;  %v498_v14 = vcombine.low %v482_v10, %v483_v4  ;;  %v499_v19 = vcombine.low %v484_v11, %v485_v5 }
  0xf1   :  { %v461_v12 = vadd.f32 %v460_v6, %v459_v61  ;;  %v475_v13 = vadd.f32 %v474_v7, %v473_v62 }
  0xf2   :  { %v455_v17 = vrot.slane %v454_v8, 1  ;;  %v469_v18 = vrot.slane %v468_v9, 1  ;;  %v508_v25 = vrot.slane %v498_v14, %v507_v16  ;;  %v515_v26 = vrot.slane %v499_v19, %v507_v16 }
  0xf3   :  { %v462_v45 = vrot.slane %v461_v12, 1  ;;  %v476_v21 = vrot.slane %v475_v13, 1 }
  0xf4   :  { %v456_v46 = vadd.f32 %v455_v17, %v454_v8  ;;  %v470_v22 = vadd.f32 %v469_v18, %v468_v9  ;;  %v530_v15 = vcombine.low %v508_v25, %v515_v26 }
  0xf5   :  { %v463_v23 = vadd.f32 %v462_v45, %v461_v12  ;;  %v477_v24 = vadd.f32 %v476_v21, %v475_v13 }
  0xf6   :  { %v486_v27 = vadd.f32 %v480_v63, %v456_v46  ;;  %v488_v29 = vadd.f32 %v480_v63, %v470_v22  ;;  %v538_v37 = vrot.slane %v530_v15, %v507_v16 }
  0xf7   :  { %v487_v28 = vadd.f32 %v480_v63, %v463_v23  ;;  %v489_v30 = vadd.f32 %v480_v63, %v477_v24 }
  0xf9   :  { %v500_v32 = vcombine.low %v486_v27, %v487_v28  ;;  %v501_v33 = vcombine.low %v488_v29, %v489_v30 }
  0xfb   :  { %v522_v34 = vrot.slane %v500_v32, %v507_v16  ;;  %v529_v35 = vrot.slane %v501_v33, %v507_v16 }
  0xfd   :  { %v531_v36 = vcombine.low %v522_v34, %v529_v35 }
  0xff   :  { %v545_v38 = vrot.slane %v531_v36, %v507_v16 }
 0x101   :  { %v546_v39 = vcombine.low %v538_v37, %v545_v38 }
 0x103   :  { %548 = vst [vmem:[#allocation5] sm:$0xff] %v546_v39 }
 0x104   :  { %621 = shalt.err (!%p618_p9)
}
 0x105   :  { %558 = dma.vmem_to_hbm [thread:$0]  %s556_s17, 128, %s720_s2, [#allocation4]  }
 0x106   :  { %632 = dma.done.wait [#allocation4], 128  }
 0x107   :  { %633 = vsyncadd [#allocation4], 4294967168 }
 0x108   :  { %562 = vsyncpa [#allocation3], 1 }
 0x109   :  { %563 = vsyncpa [#allocation4], 1 }

</bundles_post_ra>
